<compile_context>
chip_gen: v5e
topology: v5e:2x2
jax: 0.10.0
libtpu: 0.0.40
codegen_flags: <defaults>
</compile_context>

<pallas_src>
import functools
import numpy as np

import jax
import jax.numpy as jnp
from jax import lax
from jax.experimental import pallas as pl
from jax.experimental.pallas import tpu as pltpu


# ----------------------------------------------------------------------------
# In-kernel helpers
# ----------------------------------------------------------------------------
_SQRT1_2 = 0.7071067811865476
_TWO_PI = 6.283185307179586
_LN_EPS = 1e-6


def _erf_approx(x):
    # Abramowitz & Stegun 7.1.26, max abs error ~1.5e-7 (f32-level accuracy).
    # Only needs exp, which goes to the EUP.
    a1, a2, a3, a4, a5 = 0.254829592, -0.284496736, 1.421413741, -1.453152027, 1.061405429
    p = 0.3275911
    ax = jnp.abs(x)
    t = 1.0 / (1.0 + p * ax)
    poly = ((((a5 * t + a4) * t + a3) * t + a2) * t + a1) * t
    y = 1.0 - poly * jnp.exp(-ax * ax)
    return jnp.where(x < 0.0, -y, y)


def _gelu_exact(x):
    # PyTorch nn.GELU() default: 0.5*x*(1+erf(x/sqrt(2)))
    return 0.5 * x * (1.0 + _erf_approx(x * _SQRT1_2))


def _layernorm_lastdim(x, gamma, beta):
    # LayerNorm2d over channels (channels are the last/lane axis here).
    mu = jnp.mean(x, axis=-1, keepdims=True)
    xc = x - mu
    var = jnp.mean(xc * xc, axis=-1, keepdims=True)
    return xc * lax.rsqrt(var + _LN_EPS) * gamma + beta   # rsqrt -> EUP slot


# ----------------------------------------------------------------------------
# Pallas kernels
# ----------------------------------------------------------------------------
def sparse_pe_kernel(coords_ref, labels_ref, gauss_ref, table_ref, out_ref,
                     *, inv_w, inv_h):
    """Random-Fourier positional encoding + label-conditioned embedding add.

    coords_ref: (M, 2) raw pixel coords (x, y)
    labels_ref: (M, 1) float labels: -1 (pad), 0, 1 (points), 2, 3 (box corners)
                labels are exact integer-valued floats (PyTorch semantics), so
                float equality below is safe.
    gauss_ref:  (2, F) gaussian matrix, F = embed_dim // 2
    table_ref:  (5, E) additive table; row k corresponds to label (k - 1)
    out_ref:    (M, E)
    """
    # normalize to [0,1] then map to [-1,1]; 1/W and 1/H are baked-in scalars
    x = (coords_ref[:, 0:1] + 0.5) * (2.0 * inv_w) - 1.0
    y = (coords_ref[:, 1:2] + 0.5) * (2.0 * inv_h) - 1.0
    # (M,2) @ (2,F) done as two broadcast MACs on the VPU (tiny contraction)
    proj = _TWO_PI * (x * gauss_ref[0:1, :] + y * gauss_ref[1:2, :])
    pe = jnp.concatenate([jnp.sin(proj), jnp.cos(proj)], axis=-1)       # (M, E)

    labels = labels_ref[...]                                            # (M, 1)
    lab_vals = lax.broadcasted_iota(jnp.int32, (1, 5), 1).astype(jnp.float32) - 1.0
    onehot = (labels == lab_vals).astype(jnp.float32)                   # (M, 5)
    keep = 1.0 - onehot[:, 0:1]                                         # zero pad rows
    out_ref[...] = pe * keep + jnp.dot(onehot, table_ref[...],
                                       preferred_element_type=jnp.float32)


def mask_downscale_kernel(x_ref, w1_ref, b1_ref, g1_ref, bt1_ref,
                          w2_ref, b2_ref, g2_ref, bt2_ref,
                          w3_ref, b3_ref, o_ref, *, dot_dtype):
    """Fused conv1(2x2/s2)+LN+GELU -> conv2(2x2/s2)+LN+GELU -> conv3(1x1)+bias.

    x_ref : (bm, 16) patch rows; column layout (sy, sx, ky, kx)
    w1_ref: (4, C1)        rows = (ky, kx)
    w2_ref: (4*C1, C2)     rows = (sy, sx, c1)
    w3_ref: (C2, E)
    biases / LN gammas / betas shaped (1, C)
    o_ref : (bm, E)  lane-dense output
    """
    x = x_ref[...]
    w1 = w1_ref[...]

    # ---- conv1 on the VPU (K=4 is far too small for the MXU), per (sy,sx)
    a1_parts = []
    for s in range(4):
        z = x[:, 4 * s:4 * s + 1] * w1[0:1, :]
        for k in range(1, 4):
            z = z + x[:, 4 * s + k:4 * s + k + 1] * w1[k:k + 1, :]
        z = z + b1_ref[...]
        a1_parts.append(_gelu_exact(_layernorm_lastdim(z, g1_ref[...], bt1_ref[...])))
    a1 = jnp.concatenate(a1_parts, axis=-1)                # (bm, 4*C1), (sy,sx,c1)

    # ---- conv2 as one matmul (K = 4*C1 = mask_in_chans) + LN + GELU
    z2 = jnp.dot(a1.astype(dot_dtype), w2_ref[...].astype(dot_dtype),
                 preferred_element_type=jnp.float32) + b2_ref[...]
    a2 = _gelu_exact(_layernorm_lastdim(z2, g2_ref[...], bt2_ref[...]))

    # ---- conv3 (1x1): the real MXU matmul, lane-dense E-wide output
    o_ref[...] = jnp.dot(a2.astype(dot_dtype), w3_ref[...].astype(dot_dtype),
                         preferred_element_type=jnp.float32) + b3_ref[...]


# ----------------------------------------------------------------------------
# Pallas call wrappers
# ----------------------------------------------------------------------------
def sparse_pe_call(coords, labels, gauss, table, input_image_size):
    """coords (M,2), labels (M,1) -> (M,E); single pallas_call for all prompts."""
    H_in, W_in = input_image_size
    M = coords.shape[0]
    E = table.shape[1]
    Mp = max(8, pl.cdiv(M, 8) * 8)                 # sublane-align tiny row counts
    if Mp != M:
        coords = jnp.pad(coords, ((0, Mp - M), (0, 0)))
        labels = jnp.pad(labels, ((0, Mp - M), (0, 0)), constant_values=-1.0)
    kern = functools.partial(sparse_pe_kernel, inv_w=1.0 / W_in, inv_h=1.0 / H_in)
    out = pl.pallas_call(
        kern,
        out_shape=jax.ShapeDtypeStruct((Mp, E), jnp.float32),
        in_specs=[pl.BlockSpec(memory_space=pltpu.MemorySpace.VMEM)] * 4,
        out_specs=pl.BlockSpec(memory_space=pltpu.MemorySpace.VMEM),
    )(coords, labels, gauss, table)
    return out[:M]


def _pick_block_m(M, K, E, max_bm=2048, vmem_budget_bytes=8 << 20):
    """Largest row tile whose double-buffered f32 in+out tiles fit the budget,
    capped so the 1-D 'parallel' grid keeps >= 2 steps when there is enough
    work (lets megacore / v7x's two TensorCores both participate)."""
    per_row = (K + E) * 4 * 2                       # f32, double-buffered in + out
    bm = max(8, min(max_bm, vmem_budget_bytes // per_row))
    if M > 8:
        bm = min(bm, pl.cdiv(M, 2))                 # keep grid length >= 2
    bm = min(bm, max(M, 8))
    return max(8, (bm // 8) * 8)                    # sublane-aligned


def mask_downscale_call(patches, w1, b1, g1, bt1, w2, b2, g2, bt2, w3, b3,
                        *, dot_dtype=jnp.float32):
    M, K = patches.shape                            # K == 16
    E = w3.shape[1]
    bm = _pick_block_m(M, K, E)
    Mp = pl.cdiv(M, bm) * bm
    if Mp != M:                                     # pad ragged last tile (no assert)
        patches = jnp.pad(patches, ((0, Mp - M), (0, 0)))
    weights = (w1, b1, g1, bt1, w2, b2, g2, bt2, w3, b3)
    kern = functools.partial(mask_downscale_kernel, dot_dtype=dot_dtype)
    out = pl.pallas_call(
        kern,
        out_shape=jax.ShapeDtypeStruct((Mp, E), jnp.float32),
        grid=(Mp // bm,),
        in_specs=[pl.BlockSpec((bm, K), lambda i: (i, 0))]
                 + [pl.BlockSpec(w.shape, lambda i: (0, 0)) for w in weights],
        out_specs=pl.BlockSpec((bm, E), lambda i: (i, 0)),
        compiler_params=pltpu.CompilerParams(dimension_semantics=("parallel",)),
    )(patches, *weights)
    return out[:M] if Mp != M else out


# ----------------------------------------------------------------------------
# Parameter init (deterministic, matches module __init__ shapes)
# ----------------------------------------------------------------------------
def init_params(key, embed_dim, mask_in_chans):
    F = embed_dim // 2
    c1 = mask_in_chans // 4
    ks = jax.random.split(key, 13)
    p = {
        "pe_gauss": jax.random.normal(ks[0], (2, F), jnp.float32),           # scale=1.0
        "point_embed": [jax.random.normal(ks[1 + i], (1, embed_dim), jnp.float32)
                        for i in range(4)],
        "not_a_point": jax.random.normal(ks[5], (1, embed_dim), jnp.float32),
        "no_mask": jax.random.normal(ks[6], (1, embed_dim), jnp.float32),
        "conv1_w": 0.2 * jax.random.normal(ks[7], (c1, 1, 2, 2), jnp.float32),
        "conv1_b": 0.1 * jax.random.normal(ks[8], (c1,), jnp.float32),
        "ln1_g": jnp.ones((c1,), jnp.float32),
        "ln1_b": jnp.zeros((c1,), jnp.float32),
        "conv2_w": 0.2 * jax.random.normal(ks[9], (mask_in_chans, c1, 2, 2), jnp.float32),
        "conv2_b": 0.1 * jax.random.normal(ks[10], (mask_in_chans,), jnp.float32),
        "ln2_g": jnp.ones((mask_in_chans,), jnp.float32),
        "ln2_b": jnp.zeros((mask_in_chans,), jnp.float32),
        "conv3_w": 0.2 * jax.random.normal(ks[11], (embed_dim, mask_in_chans, 1, 1), jnp.float32),
        "conv3_b": 0.1 * jax.random.normal(ks[12], (embed_dim,), jnp.float32),
    }
    return p


# ----------------------------------------------------------------------------
# Forward pass (glue in JAX, hot paths in fused Pallas kernels)
# ----------------------------------------------------------------------------
def _patch_rows_4x4(masks):
    """NCHW (B,1,4Ho,4Wo) -> (B*Ho*Wo, 16) rows; column layout (sy, sx, ky, kx).

    Input pixel (4h + 2*sy + ky, 4w + 2*sx + kx) feeds output pixel (h, w).
    """
    # TODO(synk): this single host-side transpose could be absorbed into the
    # kernel with strided in-kernel loads; kept outside for lowering simplicity.
    B, _, H, W = masks.shape
    Ho, Wo = H // 4, W // 4
    x = masks.reshape(B, Ho, 2, 2, Wo, 2, 2)          # (b, h, sy, ky, w, sx, kx)
    x = x.transpose(0, 1, 4, 2, 5, 3, 6)              # (b, h, w, sy, sx, ky, kx)
    return x.reshape(B * Ho * Wo, 16), (B, Ho, Wo)


def _prepare_mask_weights(params):
    c1 = params["conv1_w"].shape[0]
    c2 = params["conv2_w"].shape[0]
    w1 = params["conv1_w"][:, 0].transpose(1, 2, 0).reshape(4, c1)        # rows (ky,kx)
    w2 = params["conv2_w"].transpose(2, 3, 1, 0).reshape(4 * c1, c2)      # rows (sy,sx,c1)
    w3 = params["conv3_w"][:, :, 0, 0].T                                  # (C2, E)
    return (w1, params["conv1_b"][None, :], params["ln1_g"][None, :], params["ln1_b"][None, :],
            w2, params["conv2_b"][None, :], params["ln2_g"][None, :], params["ln2_b"][None, :],
            w3, params["conv3_b"][None, :])


def mask_downscaling(params, masks, embed_dim, dot_dtype=jnp.float32):
    patches, (B, Ho, Wo) = _patch_rows_4x4(masks)
    weights = _prepare_mask_weights(params)
    y = mask_downscale_call(patches, *weights, dot_dtype=dot_dtype)       # (M, E) lane-dense
    # NHWC -> NCHW conversion stays OUTSIDE the kernel (keeps stores lane-dense)
    return y.reshape(B, Ho, Wo, embed_dim).transpose(0, 3, 1, 2)


def prompt_encoder_forward(params, cfg, points=None, boxes=None, masks=None,
                           dot_dtype=jnp.float32):
    E = cfg["embed_dim"]
    H_emb, W_emb = cfg["image_embedding_size"]
    # additive table rows correspond to labels -1, 0, 1, 2, 3
    table = jnp.concatenate([params["not_a_point"]] + params["point_embed"], axis=0)

    if points is not None:
        bs = points[0].shape[0]
    elif boxes is not None:
        bs = boxes.shape[0]
    elif masks is not None:
        bs = masks.shape[0]
    else:
        bs = 1

    # ---- build one interleaved (bs, N, 2)/(bs, N) coord/label set so ALL
    # sparse prompt embeddings come from a single pallas_call
    coord_parts, label_parts = [], []
    if points is not None:
        coords, labels = points
        coords = coords.astype(jnp.float32)
        labels = labels.astype(jnp.float32)
        if boxes is None:  # pad with a "not a point" entry
            coords = jnp.concatenate([coords, jnp.zeros((bs, 1, 2), jnp.float32)], axis=1)
            labels = jnp.concatenate([labels, -jnp.ones((bs, 1), jnp.float32)], axis=1)
        coord_parts.append(coords)
        label_parts.append(labels)
    if boxes is not None:
        corners = boxes.astype(jnp.float32).reshape(bs, -1, 2)            # (bs, 2*nb, 2)
        ncor = corners.shape[1]
        corner_labels = jnp.tile(jnp.array([2.0, 3.0], jnp.float32), ncor // 2)
        corner_labels = jnp.broadcast_to(corner_labels[None, :], (bs, ncor))
        coord_parts.append(corners)
        label_parts.append(corner_labels)

    if coord_parts:
        coords_all = jnp.concatenate(coord_parts, axis=1)                 # (bs, N, 2)
        labels_all = jnp.concatenate(label_parts, axis=1)                 # (bs, N)
        N = coords_all.shape[1]
        pe = sparse_pe_call(coords_all.reshape(-1, 2),
                            labels_all.reshape(-1, 1),
                            params["pe_gauss"], table, cfg["input_image_size"])
        sparse = pe.reshape(bs, N, E)
    else:
        sparse = jnp.zeros((bs, 0, E), jnp.float32)

    if masks is not None:
        dense = mask_downscaling(params, masks, E, dot_dtype=dot_dtype)
    else:
        dense = jnp.broadcast_to(params["no_mask"].reshape(1, E, 1, 1),
                                 (bs, E, H_emb, W_emb))
    return sparse, dense


# ----------------------------------------------------------------------------
# Pure-JAX reference (mirrors the PyTorch module)
# ----------------------------------------------------------------------------
def _ref_pe_encoding(coords, gauss):
    c = 2.0 * coords - 1.0
    c = jnp.matmul(c, gauss, precision=lax.Precision.HIGHEST)
    c = 2.0 * np.pi * c
    return jnp.concatenate([jnp.sin(c), jnp.cos(c)], axis=-1)


def _ref_gelu(x):
    return 0.5 * x * (1.0 + lax.erf(x / np.sqrt(2.0)))


def _ref_layernorm2d(x, g, b, eps=1e-6):
    u = x.mean(axis=1, keepdims=True)
    s = ((x - u) ** 2).mean(axis=1, keepdims=True)
    x = (x - u) / jnp.sqrt(s + eps)
    return g[None, :, None, None] * x + b[None, :, None, None]


def _ref_conv(x, w, b, stride):
    y = lax.conv_general_dilated(x, w, (stride, stride), "VALID",
                                 dimension_numbers=("NCHW", "OIHW", "NCHW"),
                                 precision=lax.Precision.HIGHEST)
    return y + b[None, :, None, None]


def ref_forward(params, cfg, points=None, boxes=None, masks=None):
    E = cfg["embed_dim"]
    H_emb, W_emb = cfg["image_embedding_size"]
    H_in, W_in = cfg["input_image_size"]
    scale = jnp.array([1.0 / W_in, 1.0 / H_in], jnp.float32)

    if points is not None:
        bs = points[0].shape[0]
    elif boxes is not None:
        bs = boxes.shape[0]
    elif masks is not None:
        bs = masks.shape[0]
    else:
        bs = 1

    parts = []
    if points is not None:
        coords, labels = points
        coords = coords + 0.5
        if boxes is None:
            coords = jnp.concatenate([coords, jnp.zeros((bs, 1, 2))], axis=1)
            labels = jnp.concatenate([labels, -jnp.ones((bs, 1))], axis=1)
        pe = _ref_pe_encoding(coords * scale, params["pe_gauss"])
        lab = labels[..., None]
        pe = jnp.where(lab == -1, 0.0, pe)
        pe = pe + (lab == -1) * params["not_a_point"]
        pe = pe + (lab == 0) * params["point_embed"][0]
        pe = pe + (lab == 1) * params["point_embed"][1]
        parts.append(pe)
    if boxes is not None:
        b = boxes + 0.5
        corners = b.reshape(-1, 2, 2)
        pe = _ref_pe_encoding(corners * scale, params["pe_gauss"])
        pe = pe.at[:, 0, :].add(params["point_embed"][2][0])
        pe = pe.at[:, 1, :].add(params["point_embed"][3][0])
        parts.append(pe.reshape(bs, -1, E))
    sparse = jnp.concatenate(parts, axis=1) if parts else jnp.zeros((bs, 0, E))

    if masks is not None:
        x = _ref_conv(masks, params["conv1_w"], params["conv1_b"], 2)
        x = _ref_gelu(_ref_layernorm2d(x, params["ln1_g"], params["ln1_b"]))
        x = _ref_conv(x, params["conv2_w"], params["conv2_b"], 2)
        x = _ref_gelu(_ref_layernorm2d(x, params["ln2_g"], params["ln2_b"]))
        dense = _ref_conv(x, params["conv3_w"], params["conv3_b"], 1)
    else:
        dense = jnp.broadcast_to(params["no_mask"].reshape(1, E, 1, 1),
                                 (bs, E, H_emb, W_emb))
    return sparse, dense


# ----------------------------------------------------------------------------
if __name__ == "__main__":
    cfg = dict(embed_dim=32,
               image_embedding_size=(8, 8),
               input_image_size=(128, 128),
               mask_in_chans=32)

    params = init_params(jax.random.PRNGKey(0), cfg["embed_dim"], cfg["mask_in_chans"])

    kc, kb, km = jax.random.split(jax.random.PRNGKey(1), 3)
    coords = jax.random.uniform(kc, (2, 3, 2), jnp.float32, 0.0, 127.0)
    labels = jnp.array([[1.0, 0.0, 1.0], [0.0, 1.0, -1.0]], jnp.float32)
    boxes = jax.random.uniform(kb, (2, 4), jnp.float32, 0.0, 127.0)
    masks = jax.random.normal(km, (2, 1, 32, 32), jnp.float32)

    # Tolerances: GELU uses an erf polynomial approximation and in-kernel MXU
    # dots may run at the TPU's default matmul precision, while the reference
    # uses Precision.HIGHEST -> allow a small slack.
    TOL = dict(atol=2e-2, rtol=2e-2)

    # Case 1: points + boxes + masks (f32 dot operands)
    sparse, dense = prompt_encoder_forward(params, cfg, points=(coords, labels),
                                           boxes=boxes, masks=masks)
    sparse = jax.block_until_ready(sparse)
    dense = jax.block_until_ready(dense)
    sparse_r, dense_r = ref_forward(params, cfg, points=(coords, labels),
                                    boxes=boxes, masks=masks)
    np.testing.assert_allclose(np.asarray(sparse), np.asarray(sparse_r), **TOL)
    np.testing.assert_allclose(np.asarray(dense), np.asarray(dense_r), **TOL)

    # Case 2: points only (exercises padding point + no-mask dense branch)
    sparse2, dense2 = prompt_encoder_forward(params, cfg, points=(coords, labels),
                                             boxes=None, masks=None)
    sparse2 = jax.block_until_ready(sparse2)
    dense2 = jax.block_until_ready(dense2)
    sparse2_r, dense2_r = ref_forward(params, cfg, points=(coords, labels),
                                      boxes=None, masks=None)
    np.testing.assert_allclose(np.asarray(sparse2), np.asarray(sparse2_r), **TOL)
    np.testing.assert_allclose(np.asarray(dense2), np.asarray(dense2_r), **TOL)

    # Case 3: boxes only (sparse kernel sees only labels 2/3)
    sparse3, _ = prompt_encoder_forward(params, cfg, boxes=boxes)
    sparse3 = jax.block_until_ready(sparse3)
    sparse3_r, _ = ref_forward(params, cfg, boxes=boxes)
    np.testing.assert_allclose(np.asarray(sparse3), np.asarray(sparse3_r), **TOL)

    # Case 4: masks only, bf16 MXU operands (reduced-precision fast mode)
    _, dense_bf16 = prompt_encoder_forward(params, cfg, masks=masks,
                                           dot_dtype=jnp.bfloat16)
    dense_bf16 = jax.block_until_ready(dense_bf16)
    np.testing.assert_allclose(np.asarray(dense_bf16), np.asarray(dense_r),
                               atol=1e-1, rtol=1e-1)

    print("KERNEL_OK")
</pallas_src>

<mosaic_0001>
module attributes {stable_mosaic.version = 11 : i64} {
  func.func @sparse_pe_kernel(%arg0: memref<16x2xf32, #tpu.memory_space<vmem>>, %arg1: memref<16x1xf32, #tpu.memory_space<vmem>>, %arg2: memref<2x16xf32, #tpu.memory_space<vmem>>, %arg3: memref<5x32xf32, #tpu.memory_space<vmem>>, %arg4: memref<16x32xf32, #tpu.memory_space<vmem>>) attributes {dimension_semantics = [], scalar_prefetch = 0 : i64, scratch_operands = 0 : i64, tpu.core_type = #tpu.core_type<tc>} {
    %c0 = arith.constant 0 : index
    %c0_0 = arith.constant 0 : index
    %0 = vector.load %arg0[%c0, %c0_0] : memref<16x2xf32, #tpu.memory_space<vmem>>, vector<16x1xf32>
    %cst = arith.constant 5.000000e-01 : f32
    %1 = vector.broadcast %cst : f32 to vector<16x1xf32>
    %2 = arith.addf %0, %1 : vector<16x1xf32>
    %cst_1 = arith.constant 1.562500e-02 : f32
    %3 = vector.broadcast %cst_1 : f32 to vector<16x1xf32>
    %4 = arith.mulf %2, %3 : vector<16x1xf32>
    %cst_2 = arith.constant 1.000000e+00 : f32
    %5 = vector.broadcast %cst_2 : f32 to vector<16x1xf32>
    %6 = arith.subf %4, %5 : vector<16x1xf32>
    %c0_3 = arith.constant 0 : index
    %c1 = arith.constant 1 : index
    %7 = vector.load %arg0[%c0_3, %c1] : memref<16x2xf32, #tpu.memory_space<vmem>>, vector<16x1xf32>
    %cst_4 = arith.constant 5.000000e-01 : f32
    %8 = vector.broadcast %cst_4 : f32 to vector<16x1xf32>
    %9 = arith.addf %7, %8 : vector<16x1xf32>
    %cst_5 = arith.constant 1.562500e-02 : f32
    %10 = vector.broadcast %cst_5 : f32 to vector<16x1xf32>
    %11 = arith.mulf %9, %10 : vector<16x1xf32>
    %cst_6 = arith.constant 1.000000e+00 : f32
    %12 = vector.broadcast %cst_6 : f32 to vector<16x1xf32>
    %13 = arith.subf %11, %12 : vector<16x1xf32>
    %c0_7 = arith.constant 0 : index
    %c0_8 = arith.constant 0 : index
    %14 = vector.load %arg2[%c0_7, %c0_8] : memref<2x16xf32, #tpu.memory_space<vmem>>, vector<1x16xf32>
    %15 = vector.broadcast %6 : vector<16x1xf32> to vector<16x16xf32>
    %16 = vector.broadcast %14 : vector<1x16xf32> to vector<16x16xf32>
    %17 = arith.mulf %15, %16 : vector<16x16xf32>
    %c1_9 = arith.constant 1 : index
    %c0_10 = arith.constant 0 : index
    %18 = vector.load %arg2[%c1_9, %c0_10] : memref<2x16xf32, #tpu.memory_space<vmem>>, vector<1x16xf32>
    %19 = vector.broadcast %13 : vector<16x1xf32> to vector<16x16xf32>
    %20 = vector.broadcast %18 : vector<1x16xf32> to vector<16x16xf32>
    %21 = arith.mulf %19, %20 : vector<16x16xf32>
    %22 = arith.addf %17, %21 : vector<16x16xf32>
    %cst_11 = arith.constant 6.28318548 : f32
    %23 = vector.broadcast %cst_11 : f32 to vector<16x16xf32>
    %24 = arith.mulf %23, %22 : vector<16x16xf32>
    %25 = math.sin %24 : vector<16x16xf32>
    %26 = math.cos %24 : vector<16x16xf32>
    %27 = tpu.concatenate %25, %26 in 1 : vector<16x16xf32>, vector<16x16xf32> -> vector<16x32xf32>
    %c0_12 = arith.constant 0 : index
    %c0_13 = arith.constant 0 : index
    %28 = vector.load %arg1[%c0_12, %c0_13] : memref<16x1xf32, #tpu.memory_space<vmem>>, vector<16x1xf32>
    %29 = tpu.iota {dimensions = array<i32: 1>} : vector<1x5xi32>
    %30 = arith.sitofp %29 : vector<1x5xi32> to vector<1x5xf32>
    %cst_14 = arith.constant 1.000000e+00 : f32
    %31 = vector.broadcast %cst_14 : f32 to vector<1x5xf32>
    %32 = arith.subf %30, %31 : vector<1x5xf32>
    %33 = vector.broadcast %28 : vector<16x1xf32> to vector<16x5xf32>
    %34 = vector.broadcast %32 : vector<1x5xf32> to vector<16x5xf32>
    %35 = arith.cmpf oeq, %33, %34 : vector<16x5xf32>
    %36 = arith.extui %35 : vector<16x5xi1> to vector<16x5xi32>
    %37 = arith.sitofp %36 : vector<16x5xi32> to vector<16x5xf32>
    %38 = vector.extract_strided_slice %37 {offsets = [0, 0], sizes = [16, 1], strides = [1, 1]} : vector<16x5xf32> to vector<16x1xf32>
    %cst_15 = arith.constant 1.000000e+00 : f32
    %39 = vector.broadcast %cst_15 : f32 to vector<16x1xf32>
    %40 = arith.subf %39, %38 : vector<16x1xf32>
    %41 = vector.broadcast %40 : vector<16x1xf32> to vector<16x32xf32>
    %42 = arith.mulf %27, %41 : vector<16x32xf32>
    %c0_16 = arith.constant 0 : index
    %c0_17 = arith.constant 0 : index
    %43 = vector.load %arg3[%c0_16, %c0_17] : memref<5x32xf32, #tpu.memory_space<vmem>>, vector<5x32xf32>
    %cst_18 = arith.constant dense<0.000000e+00> : vector<16x32xf32>
    %44 = tpu.matmul %37, %43, %cst_18 {dimension_numbers = #tpu.dot_dimension_numbers<[1], [0], [0], [1], [0, 0, 1, 1], [], []>} : vector<16x5xf32>, vector<5x32xf32>, vector<16x32xf32> -> vector<16x32xf32>
    %45 = arith.addf %42, %44 : vector<16x32xf32>
    %c0_19 = arith.constant 0 : index
    %c0_20 = arith.constant 0 : index
    %46 = vector.load %arg4[%c0_19, %c0_20] : memref<16x32xf32, #tpu.memory_space<vmem>>, vector<16x32xf32>
    tpu.vector_store %arg4[%c0_19, %c0_20], %45 {strides = array<i32>} : memref<16x32xf32, #tpu.memory_space<vmem>>, vector<16x32xf32>,
    return
  }
}

</mosaic_0001>

<bundles_post_ra>
// kernel: tpu_custom_call.1
= control target key start
LH: loop header
LB: loop body
LE: loop exit
PB: predicated region body
PF: predicated region fallthrough
CT: control target
= control target key end

     0   :  { %v844_v3 = vmov 1   ;;  %v845_v4 = vmov 0   ;;  %s1091_s0 = inlined_call_operand.vmem [shape: f32[16,2], index: 0, kind: input, shape index: {}]   ;;  %s1092_s1 = inlined_call_operand.vmem [shape: f32[16,1], index: 1, kind: input, shape index: {}]   ;;  %s1093_s2 = inlined_call_operand.vmem [shape: f32[2,16], index: 2, kind: input, shape index: {}]   ;;  %s1094_s3 = inlined_call_operand.vmem [shape: f32[5,32], index: 3, kind: input, shape index: {}]   ;;  %s1095_s4 = inlined_call_operand.hbm [shape: f32[16,32], index: 4, kind: output, shape index: {}]  }
   0x1   :  { %v18_v0 = vld [vmem:[%s1091_s0] sm:$0xff]  ;;  %v19_v1 = vld [vmem:[%s1091_s0 + $0x8] sm:$0xff]  ;;  %814 = vset.pattern.permute.xlu1 %v844_v3  ;;  %813 = vset.pattern.permute.xlu0 %v845_v4 }
   0x2   :  { %v685_v2 = vld [vmem:[%s1092_s1] sm:$0xff]  ;;  %v20_v5 = vadd.f32 0.5, %v18_v0  ;;  %815 = vset.pattern.permute.xlu2 %v845_v4 }
   0x3   :  { %9 = vsyncpa [#allocation3], 0  ;;  %v21_v7 = vadd.f32 0.5, %v19_v1  ;;  %693 = vperm.xlu2 %815, %v685_v2   ;;  %v686_v10 = vld [vmem:[%s1092_s1 + $0x8] sm:$0xff]  ;;  %v687_v12 = vlaneseq  ;;  %v846_v17 = vmov 0.0   ;;  %vm729_vm9 = vcmask 1044480  }
   0x4   :  { %v22_v6 = vmul.f32 0.015625, %v20_v5  ;;  %v816_v20 = vld [vmem:[%s1093_s2 + $0x1] ss:$0 sm:$0xff]  ;;  %v817_v21 = vld [vmem:[%s1093_s2] ss:$0 sm:$0xff]  ;;  %vm722_vm10 = vcmask 39936  }
   0x5   :  { %v23_v9 = vmul.f32 0.015625, %v21_v7  ;;  %v688_v13 = vand.u32 127, %v687_v12  ;;  %v847_v51 = vmov 2102212464   ;;  %v848_v53 = vmov 920167782  }
   0x6   :  { %v779_v8 = vadd.f32 -1.0, %v22_v6  ;;  %v849_v56 = vmov 683565275   ;;  %v850_v59 = vmov 1326507024   ;;  %s854_s26 = smov [#allocation2]  }
   0x7   :  { %v780_v11 = vadd.f32 -1.0, %v23_v9  ;;  %v689_v14 = vcvt.s32.f32 %v688_v13  ;;  %v851_v61 = vmov 2475754826   ;;  %v852_v1 = vmov 2131351028   ;;  %s765_s27 = sshll.u32 %s854_s26, 4  ;;  %s766_s27 = int_to_ptr.vmem [resolvable:$true] %s765_s27 }
   0x8   :  { %42 = vperm.xlu1 %814, %v779_v8   ;;  %29 = vperm.xlu0 %813, %v779_v8   ;;  %s767_s30 = sshll.u32 %s1095_s4, 4  ;;  %s855_s5 = smov 128   ;;  %s768_s30 = int_to_ptr.hbm [resolvable:$true] %s767_s30 }
   0x9   :  { %v793_v15 = vadd.f32 -1.0, %v689_v14  ;;  %s856_s6 = smov 8  }
   0xb   :  { %698 = vperm.xlu2 %815, %v686_v10  }
  0x10   :  { %46 = vperm.xlu1 %814, %v780_v11   ;;  %34 = vperm.xlu0 %813, %v780_v11  }
  0x5d   :  { %v694_v16 = vpop.permute.xlu2 %693 }
  0x5e   :  { %vm701_vm0 = vcmp.eq.f32.partialorder %v694_v16, %v793_v15 }
  0x5f   :  { %v896_v18 = vsel %vm701_vm0, 1.0, %v846_v17 }
  0x60   :  { %v707_v19 = vsub.f32 1.0, %v896_v18 }
  0x62   :  { %711 = vperm.xlu2 %815, %v707_v19  }
  0x65   :  { %v699_v40 = vpop.permute.xlu2 %698 }
  0x66   :  { %vm702_vm2 = vcmp.eq.f32.partialorder %v699_v40, %v793_v15 }
  0x67   :  { %v914_v46 = vsel %vm702_vm2, 1.0, %v846_v17 }
  0x7a   :  { %v43_v22 = vpop.permute.xlu1 %42  ;;  %v30_v23 = vpop.permute.xlu0 %29 }
  0x7b   :  { %v50_v24 = vmul.f32 %v816_v20, %v43_v22  ;;  %v38_v25 = vmul.f32 %v817_v21, %v30_v23 }
  0x7d   :  { %v52_v26 = vadd.f32 %v50_v24, %v38_v25 }
  0x7f   :  { %v905_v27 = vmul.f32 6.2831855, %v52_v26 }
  0x81   :  { %v59_v28 = vand.u32 2139095040, %v905_v27  ;;  %v56_v29 = vand.u32 2147483647, %v905_v27 }
  0x82   :  { %v47_v30 = vpop.permute.xlu1 %46  ;;  %v35_v31 = vpop.permute.xlu0 %34 }
  0x83   :  { %v60_v32 = vshrl.u32 %v59_v28, 23  ;;  %v51_v33 = vmul.f32 %v816_v20, %v47_v30  ;;  %v39_v34 = vmul.f32 %v817_v21, %v35_v31  ;;  %v63_v37 = vand.u32 8388607, %v56_v29 }
  0x85   :  { %v781_v35 = vadd.s32 4294967169, %v60_v32  ;;  %v53_v36 = vadd.f32 %v51_v33, %v39_v34  ;;  %v64_v42 = vor.u32 8388608, %v63_v37 }
  0x87   :  { %v66_v38 = vadd.s32 1, %v781_v35  ;;  %v911_v39 = vmul.f32 6.2831855, %v53_v36  ;;  %v918_v49 = vshll.u32 %v64_v42, 8 }
  0x89   :  { %vm67_vm1 = vcmp.gt.s32.totalorder %v66_v38, 0  ;;  %v214_v41 = vand.u32 2139095040, %v911_v39  ;;  %v211_v50 = vand.u32 2147483647, %v911_v39  ;;  %v105_v9 = vand.u32 65535, %v918_v49 }
  0x8a   :  { %v68_v43 = vsel %vm67_vm1, %v66_v38, 0  ;;  %v106_v17 = vshrl.u32 %v918_v49, 16 }
  0x8b   :  { %v70_v44 = vand.u32 31, %v68_v43  ;;  %v215_v45 = vshrl.u32 %v214_v41, 23  ;;  %v916_v47 = vshrl.u32 %v68_v43, 5  ;;  %v949_v22 = vand.u32 8388607, %v211_v50 }
  0x8d   :  { %v71_v48 = vsub.s32 32, %v70_v44  ;;  %v82_v52 = vshll.u32 %v847_v51, %v70_v44  ;;  %v85_v54 = vshll.u32 %v848_v53, %v70_v44  ;;  %v784_v55 = vadd.s32 4294967169, %v215_v45 }
  0x8e   :  { %v73_v57 = vshll.u32 %v849_v56, %v70_v44  ;;  %v76_v63 = vshll.u32 %v851_v61, %v70_v44  ;;  %v79_v3 = vshll.u32 %v852_v1, %v70_v44  ;;  %vm91_vm3 = vcmp.lt.s32.totalorder %v916_v47, 4 }
  0x8f   :  { %v83_v58 = vshrl.u32 %v848_v53, %v71_v48  ;;  %v86_v60 = vshrl.u32 %v850_v59, %v71_v48  ;;  %v74_v62 = vshrl.u32 %v851_v61, %v71_v48  ;;  %v221_v0 = vadd.s32 1, %v784_v55 }
  0x90   :  { %v77_v2 = vshrl.u32 %v852_v1, %v71_v48  ;;  %v80_v5 = vshrl.u32 %v847_v51, %v71_v48  ;;  %vm88_vm5 = vcmp.lt.s32.totalorder %v916_v47, 1  ;;  %vm90_vm6 = vcmp.lt.s32.totalorder %v916_v47, 3 }
  0x91   :  { %v84_v6 = vor.u32 %v83_v58, %v82_v52  ;;  %v87_v7 = vor.u32 %v86_v60, %v85_v54  ;;  %v75_v8 = vor.u32 %v74_v62, %v73_v57  ;;  %vm222_vm4 = vcmp.gt.s32.totalorder %v221_v0, 0  ;;  %v721_v58 = vld [vmem:[%s1094_s3] sm:$0x1f]  ;;  %s853_s3 = smov 16  }
  0x92   :  { %v78_v10 = vor.u32 %v77_v2, %v76_v63  ;;  %v81_v11 = vor.u32 %v80_v5, %v79_v3  ;;  %v223_v14 = vsel %vm222_vm4, %v221_v0, 0  ;;  %v72_v25 = vshrl.u32 %v849_v56, %v71_v48  ;;  %796 = vmatpush.msk.msra.mxu0 %vm729_vm9, %v721_v58  ;;  %799 = vmatpush.msk.msra.mxu1 %vm729_vm9, %v721_v58 }
  0x93   :  { %v97_v12 = vsel %vm91_vm3, %v84_v6, 920167782  ;;  %v101_v13 = vsel %vm91_vm3, %v87_v7, 1326507024  ;;  %v935_v15 = vand.u32 31, %v223_v14  ;;  %v951_v23 = vshrl.u32 %v223_v14, 5  ;;  %797 = vmatmul.msk.f32.vlgmr.msra.gmra.mxu0 %vm722_vm10, %v896_v18  ;;  %798 = vmatmul.msk.f32.vlgmr.msra.gmra.mxu1 %vm722_vm10, %v914_v46 }
  0x94   :  { %v96_v16 = vsel %vm88_vm5, %v75_v8, %v78_v10  ;;  %v98_v19 = vsel %vm90_vm6, %v81_v11, %v97_v12  ;;  %v100_v20 = vsel %vm88_vm5, %v78_v10, %v81_v11  ;;  %v102_v21 = vsel %vm90_vm6, %v84_v6, %v101_v13 }
  0x95   :  { %v954_v24 = vsub.s32 32, %v935_v15  ;;  %vm89_vm7 = vcmp.lt.s32.totalorder %v916_v47, 2  ;;  %v237_v26 = vshll.u32 %v847_v51, %v935_v15  ;;  %v93_v28 = vsel %vm91_vm3, %v81_v11, 2102212464 }
  0x96   :  { %v99_v30 = vsel %vm89_vm7, %v96_v16, %v98_v19  ;;  %v103_v31 = vsel %vm89_vm7, %v100_v20, %v102_v21  ;;  %v240_v36 = vshll.u32 %v848_v53, %v935_v15  ;;  %v971_v37 = vsel %vm88_vm5, %v72_v25, %v75_v8 }
  0x97   :  { %v238_v32 = vshrl.u32 %v848_v53, %v954_v24  ;;  %v241_v33 = vshrl.u32 %v850_v59, %v954_v24  ;;  %v107_v34 = vand.u32 65535, %v103_v31  ;;  %v108_v35 = vshrl.u32 %v103_v31, 16 }
  0x98   :  { %v129_v38 = vand.u32 65535, %v99_v30  ;;  %v130_v40 = vshrl.u32 %v99_v30, 16  ;;  %vm246_vm8 = vcmp.lt.s32.totalorder %v951_v23, 4  ;;  %v94_v42 = vsel %vm90_vm6, %v78_v10, %v93_v28 }
  0x99   :  { %v239_v41 = vor.u32 %v238_v32, %v237_v26  ;;  %v110_v43 = vmul.u32 %v108_v35, %v105_v9  ;;  %v242_v44 = vor.u32 %v241_v33, %v240_v36  ;;  %v111_v45 = vmul.u32 %v107_v34, %v106_v17 }
  0x9a   :  { %v132_v48 = vmul.u32 %v130_v40, %v105_v9  ;;  %v219_v52 = vor.u32 8388608, %v949_v22  ;;  %v109_v54 = vmul.u32 %v107_v34, %v105_v9  ;;  %v112_v55 = vmul.u32 %v108_v35, %v106_v17 }
  0x9b   :  { %v252_v53 = vsel %vm246_vm8, %v239_v41, 920167782  ;;  %v113_v57 = vshll.u32 %v110_v43, 16  ;;  %v115_v59 = vshll.u32 %v111_v45, 16  ;;  %v131_v60 = vmul.u32 %v129_v38, %v105_v9 }
  0x9c   :  { %v133_v63 = vmul.u32 %v129_v38, %v106_v17  ;;  %v135_v0 = vshll.u32 %v132_v48, 16  ;;  %v256_v2 = vsel %vm246_vm8, %v242_v44, 1326507024  ;;  %v114_v3 = vshrl.u32 %v110_v43, 16 }
  0x9d   :  { %vm117_vm11 = vc.u32 %v109_v54, %v113_v57  ;;  %v119_v62 = vadd.s32 %v113_v57, %v109_v54  ;;  %v134_v6 = vmul.u32 %v130_v40, %v106_v17  ;;  %v228_v9 = vshll.u32 %v849_v56, %v935_v15 }
  0x9e   :  { %v118_v5 = vsel %vm117_vm11, 1, %v845_v4  ;;  %v137_v8 = vshll.u32 %v133_v63, 16  ;;  %vm139_vm13 = vc.u32 %v131_v60, %v135_v0  ;;  %v141_v11 = vadd.s32 %v135_v0, %v131_v60 }
  0x9f   :  { %v120_v7 = vadd.s32 %v118_v5, %v112_v55  ;;  %vm121_vm12 = vc.u32 %v119_v62, %v115_v59  ;;  %v229_v12 = vshrl.u32 %v851_v61, %v954_v24  ;;  %v140_v13 = vsel %vm139_vm13, 1, %v845_v4 }
  0xa0   :  { %v122_v10 = vsel %vm121_vm12, 1, %v845_v4  ;;  %v231_v14 = vshll.u32 %v851_v61, %v935_v15  ;;  %v232_v16 = vshrl.u32 %v852_v1, %v954_v24  ;;  %v116_v17 = vshrl.u32 %v111_v45, 16 }
  0xa1   :  { %v124_v18 = vadd.s32 %v122_v10, %v120_v7  ;;  %v142_v19 = vadd.s32 %v140_v13, %v134_v6  ;;  %vm143_vm14 = vc.u32 %v141_v11, %v137_v8  ;;  %v997_v20 = vor.u32 %v229_v12, %v228_v9 }
  0xa2   :  { %v136_v22 = vshrl.u32 %v132_v48, 16  ;;  %v144_v25 = vsel %vm143_vm14, 1, %v845_v4  ;;  %v1000_v26 = vor.u32 %v232_v16, %v231_v14  ;;  %v234_v30 = vshll.u32 %v852_v1, %v935_v15 }
  0xa3   :  { %v125_v21 = vadd.s32 %v124_v18, %v114_v3  ;;  %v146_v28 = vadd.s32 %v144_v25, %v142_v19  ;;  %v235_v61 = vshrl.u32 %v847_v51, %v954_v24  ;;  %vm243_vm15 = vcmp.lt.s32.totalorder %v951_v23, 1 }
  0xa4   :  { %v138_v32 = vshrl.u32 %v133_v63, 16  ;;  %vm245_vm0 = vcmp.lt.s32.totalorder %v951_v23, 3  ;;  %v251_v33 = vsel %vm243_vm15, %v997_v20, %v1000_v26  ;;  %v1016_v15 = vshll.u32 %v219_v52, 8 }
  0xa5   :  { %v1007_v31 = vadd.s32 %v125_v21, %v116_v17  ;;  %v147_v34 = vadd.s32 %v146_v28, %v136_v22  ;;  %v236_v35 = vor.u32 %v235_v61, %v234_v30  ;;  %v257_v1 = vsel %vm245_vm0, %v239_v41, %v256_v2 }
  0xa6   :  { %v95_v51 = vsel %vm89_vm7, %v971_v37, %v94_v42  ;;  %v1021_v36 = vadd.s32 %v141_v11, %v137_v8  ;;  %vm244_vm1 = vcmp.lt.s32.totalorder %v951_v23, 2  ;;  %v260_v44 = vand.u32 65535, %v1016_v15 }
  0xa7   :  { %v148_v38 = vadd.s32 %v147_v34, %v138_v32  ;;  %v253_v40 = vsel %vm245_vm0, %v236_v35, %v252_v53  ;;  %v255_v43 = vsel %vm243_vm15, %v1000_v26, %v236_v35  ;;  %v149_v37 = vmul.u32 %v918_v49, %v95_v51 }
  0xa8   :  { %vm151_vm2 = vc.u32 %v1007_v31, %v1021_v36  ;;  %v254_v41 = vsel %vm244_vm1, %v251_v33, %v253_v40  ;;  %v258_v47 = vsel %vm244_vm1, %v255_v43, %v257_v1  ;;  %v261_v48 = vshrl.u32 %v1016_v15, 16 }
  0xa9   :  { %v152_v42 = vadd.s32 1, %v148_v38  ;;  %v262_v45 = vand.u32 65535, %v258_v47  ;;  %v263_v52 = vshrl.u32 %v258_v47, 16  ;;  %v284_v53 = vand.u32 65535, %v254_v41 }
  0xaa   :  { %v285_v54 = vshrl.u32 %v254_v41, 16  ;;  %v248_v22 = vsel %vm246_vm8, %v236_v35, 2102212464  ;;  %v227_v61 = vshrl.u32 %v849_v56, %v954_v24  ;;  %vm58_vm11 = vcmp.lt.s32.totalorder %v905_v27, 0 }
  0xab   :  { %v153_v55 = vsel %vm151_vm2, %v152_v42, %v148_v38  ;;  %v265_v58 = vmul.u32 %v263_v52, %v260_v44  ;;  %v266_v59 = vmul.u32 %v262_v45, %v261_v48  ;;  %v288_v62 = vmul.u32 %v284_v53, %v261_v48 }
  0xac   :  { %v154_v57 = vadd.s32 %v153_v55, %v149_v37  ;;  %v287_v60 = vmul.u32 %v285_v54, %v260_v44  ;;  %v264_v0 = vmul.u32 %v262_v45, %v260_v44  ;;  %v267_v3 = vmul.u32 %v263_v52, %v261_v48 }
  0xad   :  { %v268_v2 = vshll.u32 %v265_v58, 16  ;;  %v286_v49 = vmul.u32 %v284_v53, %v260_v44  ;;  %v270_v7 = vshll.u32 %v266_v59, 16  ;;  %v292_v10 = vshll.u32 %v288_v62, 16 }
  0xae   :  { %v155_v63 = vadd.s32 536870912, %v154_v57  ;;  %v290_v5 = vshll.u32 %v287_v60, 16  ;;  %v289_v13 = vmul.u32 %v285_v54, %v261_v48  ;;  %v269_v25 = vshrl.u32 %v265_v58, 16 }
  0xaf   :  { %vm272_vm3 = vc.u32 %v264_v0, %v268_v2  ;;  %v274_v8 = vadd.s32 %v268_v2, %v264_v0  ;;  %v271_v32 = vshrl.u32 %v266_v59, 16  ;;  %v291_v34 = vshrl.u32 %v287_v60, 16 }
  0xb0   :  { %v1038_v6 = vshrl.u32 %v155_v63, 30  ;;  %v273_v9 = vsel %vm272_vm3, 1, %v845_v4  ;;  %vm294_vm4 = vc.u32 %v286_v49, %v290_v5  ;;  %v296_v11 = vadd.s32 %v290_v5, %v286_v49 }
  0xb1   :  { %v275_v18 = vadd.s32 %v273_v9, %v267_v3  ;;  %vm276_vm5 = vc.u32 %v274_v8, %v270_v7  ;;  %v295_v16 = vsel %vm294_vm4, 1, %v845_v4  ;;  %v247_v38 = vsel %vm243_vm15, %v227_v61, %v997_v20 }
  0xb2   :  { %v157_v12 = vshll.u32 %v1038_v6, 30  ;;  %v277_v14 = vsel %vm276_vm5, 1, %v845_v4  ;;  %vm298_vm6 = vc.u32 %v296_v11, %v292_v10  ;;  %v297_v21 = vadd.s32 %v295_v16, %v289_v13 }
  0xb3   :  { %v279_v19 = vadd.s32 %v277_v14, %v275_v18  ;;  %v299_v28 = vsel %vm298_vm6, 1, %v845_v4  ;;  %v249_v35 = vsel %vm245_vm0, %v1000_v26, %v248_v22  ;;  %v293_v43 = vshrl.u32 %v288_v62, 16 }
  0xb4   :  { %v158_v17 = vsub.s32 %v154_v57, %v157_v12  ;;  %v301_v1 = vadd.s32 %v299_v28, %v297_v21  ;;  %v300_v47 = vadd.s32 %v296_v11, %v292_v10  ;;  %v250_v56 = vsel %vm244_vm1, %v247_v38, %v249_v35 }
  0xb5   :  { %v280_v33 = vadd.s32 %v279_v19, %v269_v25  ;;  %v304_v20 = vmul.u32 %v1016_v15, %v250_v56  ;;  %v150_v45 = vadd.s32 %v1021_v36, %v1007_v31  ;;  %v180_v49 = vsub.s32 4, %v1038_v6 }
  0xb6   :  { %vm159_vm7 = vcmp.lt.s32.totalorder %v158_v17, 0  ;;  %v160_v30 = vsub.s32 0, %v158_v17  ;;  %v302_v41 = vadd.s32 %v301_v1, %v291_v34  ;;  %vm57_vm12 = vcmp.le.f32.partialorder %v56_v29, 0.7853982 }
  0xb7   :  { %v281_v4 = vadd.s32 %v280_v33, %v271_v32  ;;  %v181_v10 = vsel %vm58_vm11, %v180_v49, %v1038_v6  ;;  %vm199_vm14 = vweird.f32 %v905_v27  ;;  %vm213_vm0 = vcmp.lt.s32.totalorder %v911_v39, 0 }
  0xb8   :  { %v161_v51 = vsel %vm159_vm7, %v160_v30, %v158_v17  ;;  %v303_v24 = vadd.s32 %v302_v41, %v293_v43  ;;  %v183_v14 = vsel %vm57_vm12, 0, %v181_v10  ;;  %vm212_vm6 = vcmp.le.f32.partialorder %v211_v50, 0.7853982 }
  0xb9   :  { %v162_v40 = vclz %v161_v51  ;;  %vm306_vm8 = vc.u32 %v281_v4, %v300_v47  ;;  %v305_v21 = vadd.s32 %v300_v47, %v281_v4  ;;  %v200_v61 = vadd.s32 3, %v183_v14 }
  0xba   :  { %v307_v42 = vadd.s32 1, %v303_v24  ;;  %v510_v56 = vand.u32 3, %v183_v14 }
  0xbb   :  { %v782_v37 = vadd.s32 4294967294, %v162_v40  ;;  %v201_v40 = vand.u32 3, %v200_v61 }
  0xbc   :  { %v308_v52 = vsel %vm306_vm8, %v307_v42, %v303_v24  ;;  %vm511_vm1 = vcmp.lt.s32.totalorder %v510_v56, 2  ;;  %vm512_vm2 = vcmp.eq.s32.totalorder %v510_v56, 0  ;;  %vm515_vm5 = vcmp.eq.s32.totalorder %v510_v56, 2  ;;  %v712_v61 = vpop.permute.xlu2 %711 }
  0xbd   :  { %vm783_vm9 = vcmp.lt.s32.totalorder %v782_v37, 0  ;;  %v309_v53 = vadd.s32 %v308_v52, %v304_v20  ;;  %vm206_vm15 = vcmp.eq.s32.totalorder %v201_v40, 2  ;;  %vm202_vm3 = vcmp.lt.s32.totalorder %v201_v40, 2 }
  0xbe   :  { %v165_v44 = vsel %vm783_vm9, 0, %v782_v37  ;;  %vm203_vm4 = vcmp.eq.s32.totalorder %v201_v40, 0 }
  0xbf   :  { %v166_v26 = vsub.s32 32, %v165_v44  ;;  %v170_v48 = vsub.s32 4294967266, %v165_v44  ;;  %v167_v54 = vshll.u32 %v158_v17, %v165_v44  ;;  %v310_v58 = vadd.s32 536870912, %v309_v53 }
  0xc1   :  { %v168_v55 = vshrl.u32 %v150_v45, %v166_v26  ;;  %v171_v57 = vadd.s32 127, %v170_v48  ;;  %v1060_v60 = vshrl.u32 %v310_v58, 30 }
  0xc3   :  { %v169_v23 = vor.u32 %v168_v55, %v167_v54  ;;  %v172_v59 = vshll.u32 %v171_v57, 23  ;;  %v312_v63 = vshll.u32 %v1060_v60, 30  ;;  %v335_v54 = vsub.s32 4, %v1060_v60 }
  0xc5   :  { %v173_v62 = vor.u32 4788187, %v172_v59  ;;  %v176_v15 = vcvt.s32.f32 %v169_v23  ;;  %v313_v2 = vsub.s32 %v309_v53, %v312_v63 }
  0xc7   :  { %v174_v0 = vand.u32 2147483647, %v173_v62  ;;  %vm314_vm10 = vcmp.lt.s32.totalorder %v313_v2, 0  ;;  %v315_v31 = vsub.s32 0, %v313_v2 }
  0xc9   :  { %v177_v3 = vmul.f32 %v176_v15, %v174_v0  ;;  %v316_v5 = vsel %vm314_vm10, %v315_v31, %v313_v2  ;;  %v336_v0 = vsel %vm213_vm0, %v335_v54, %v1060_v60 }
  0xca   :  { %v317_v8 = vclz %v316_v5 }
  0xcb   :  { %v178_v36 = vxor.u32 2147483648, %v177_v3 }
  0xcc   :  { %v785_v12 = vadd.s32 4294967294, %v317_v8 }
  0xcd   :  { %v179_v7 = vsel %vm58_vm11, %v178_v36, %v177_v3  ;;  %v708_v36 = vsub.f32 1.0, %v914_v46 }
  0xce   :  { %v182_v9 = vsel %vm57_vm12, %v905_v27, %v179_v7  ;;  %vm786_vm13 = vcmp.lt.s32.totalorder %v785_v12, 0 }
  0xcf   :  { %v184_v11 = vmul.f32 %v182_v9, %v182_v9  ;;  %v320_v16 = vsel %vm786_vm13, 0, %v785_v12  ;;  %vm354_vm13 = vweird.f32 %v911_v39 }
  0xd0   :  { %v321_v22 = vsub.s32 32, %v320_v16  ;;  %v325_v25 = vsub.s32 4294967266, %v320_v16  ;;  %v322_v32 = vshll.u32 %v313_v2, %v320_v16  ;;  %v338_v2 = vsel %vm212_vm6, 0, %v336_v0 }
  0xd1   :  { %v185_v18 = vmul.f32 -0.001358992, %v184_v11  ;;  %v192_v13 = vmul.f32 -0.00019511016, %v184_v11  ;;  %v355_v5 = vadd.s32 3, %v338_v2 }
  0xd2   :  { %v323_v30 = vshrl.u32 %v305_v21, %v321_v22  ;;  %v326_v33 = vadd.s32 127, %v325_v25 }
  0xd3   :  { %v186_v17 = vadd.f32 0.041655596, %v185_v18  ;;  %v193_v19 = vadd.f32 0.008332121, %v192_v13  ;;  %v664_v13 = vand.u32 3, %v338_v2 }
  0xd4   :  { %v324_v1 = vor.u32 %v323_v30, %v322_v32  ;;  %v327_v51 = vshll.u32 %v326_v33, 23 }
  0xd5   :  { %v187_v28 = vmul.f32 %v186_v17, %v184_v11  ;;  %v194_v29 = vmul.f32 %v193_v19, %v184_v11  ;;  %vm665_vm8 = vcmp.lt.s32.totalorder %v664_v13, 2  ;;  %vm666_vm9 = vcmp.eq.s32.totalorder %v664_v13, 0 }
  0xd6   :  { %v328_v43 = vor.u32 4788187, %v327_v51  ;;  %v331_v47 = vcvt.s32.f32 %v324_v1  ;;  %vm669_vm10 = vcmp.eq.s32.totalorder %v664_v13, 2 }
  0xd7   :  { %v188_v34 = vadd.f32 -0.4999988, %v187_v28  ;;  %v195_v6 = vadd.f32 -0.16666654, %v194_v29 }
  0xd8   :  { %v329_v4 = vand.u32 2147483647, %v328_v43 }
  0xd9   :  { %v189_v38 = vmul.f32 %v188_v34, %v184_v11  ;;  %v196_v35 = vmul.f32 %v195_v6, %v184_v11  ;;  %v356_v11 = vand.u32 3, %v355_v5 }
  0xda   :  { %v332_v44 = vmul.f32 %v331_v47, %v329_v4 }
  0xdb   :  { %v190_v41 = vadd.f32 1.0, %v189_v38  ;;  %v197_v37 = vadd.f32 1.0, %v196_v35  ;;  %vm361_vm7 = vcmp.eq.s32.totalorder %v356_v11, 2  ;;  %vm358_vm11 = vcmp.eq.s32.totalorder %v356_v11, 0 }
  0xdc   :  { %v333_v26 = vxor.u32 2147483648, %v332_v44  ;;  %vm357_vm12 = vcmp.lt.s32.totalorder %v356_v11, 2 }
  0xdd   :  { %v198_v24 = vmul.f32 %v197_v37, %v182_v9  ;;  %v207_v42 = vxor.u32 2147483648, %v190_v41 }
  0xde   :  { %v334_v58 = vsel %vm213_vm0, %v333_v26, %v332_v44 }
  0xdf   :  { %v204_v20 = vxor.u32 2147483648, %v198_v24  ;;  %v208_v45 = vsel %vm206_vm15, %v207_v42, %v198_v24  ;;  %v517_v52 = vsel %vm515_vm5, %v207_v42, %v198_v24  ;;  %v337_v62 = vsel %vm212_vm6, %v911_v39, %v334_v58 }
  0xe0   :  { %v339_v63 = vmul.f32 %v337_v62, %v337_v62  ;;  %vm758_vm15 = vcmask 261120  }
  0xe1   :  { %v514_v48 = vsel %vm512_vm2, %v190_v41, %v204_v20  ;;  %v205_v53 = vsel %vm203_vm4, %v190_v41, %v204_v20 }
  0xe2   :  { %v518_v55 = vsel %vm511_vm1, %v514_v48, %v517_v52  ;;  %v209_v57 = vsel %vm202_vm3, %v205_v53, %v208_v45  ;;  %v340_v50 = vmul.f32 -0.001358992, %v339_v63  ;;  %v347_v15 = vmul.f32 -0.00019511016, %v339_v63 }
  0xe3   :  { %v519_v23 = vsel %vm199_vm14, nan, %v518_v55  ;;  %v210_v59 = vsel %vm199_vm14, nan, %v209_v57  ;;  %vm682_vm14 = vcmask 130048  }
  0xe4   :  { %676 = vrot.lane.b32.xlu0 %v519_v23, %s853_s3  ;;  %v341_v3 = vadd.f32 0.041655596, %v340_v50  ;;  %v348_v31 = vadd.f32 0.008332121, %v347_v15 }
  0xe6   :  { %v342_v49 = vmul.f32 %v341_v3, %v339_v63  ;;  %v349_v27 = vmul.f32 %v348_v31, %v339_v63 }
  0xe8   :  { %v343_v7 = vadd.f32 -0.4999988, %v342_v49  ;;  %v350_v8 = vadd.f32 -0.16666654, %v349_v27 }
  0xea   :  { %v344_v9 = vmul.f32 %v343_v7, %v339_v63  ;;  %v351_v10 = vmul.f32 %v350_v8, %v339_v63 }
  0xec   :  { %716 = vperm.xlu0 %813, %v708_v36   ;;  %v345_v12 = vadd.f32 1.0, %v344_v9  ;;  %v352_v18 = vadd.f32 1.0, %v351_v10 }
  0xee   :  { %v353_v60 = vmul.f32 %v352_v18, %v337_v62  ;;  %v362_v14 = vxor.u32 2147483648, %v345_v12 }
  0xf0   :  { %v359_v16 = vxor.u32 2147483648, %v353_v60  ;;  %v363_v17 = vsel %vm361_vm7, %v362_v14, %v353_v60  ;;  %v671_v19 = vsel %vm669_vm10, %v362_v14, %v353_v60 }
  0xf2   :  { %v668_v46 = vsel %vm666_vm9, %v345_v12, %v359_v16  ;;  %v360_v21 = vsel %vm358_vm11, %v345_v12, %v359_v16 }
  0xf3   :  { %v672_v22 = vsel %vm665_vm8, %v668_v46, %v671_v19  ;;  %v364_v25 = vsel %vm357_vm12, %v360_v21, %v363_v17 }
  0xf4   :  { %v673_v28 = vsel %vm354_vm13, nan, %v672_v22  ;;  %v365_v29 = vsel %vm354_vm13, nan, %v364_v25 }
  0xf5   :  { %678 = vrot.lane.b32.xlu1 %v673_v28, %s853_s3 }
 0x110   :  { %v750_v33 = vpop.f32.mrf.mxu0  ;;  %v753_v35 = vpop.f32.mrf.mxu1 }
 0x156   :  { %v677_v30 = vpop.permute.xlu0 %676 }
 0x157   :  { %v683_v32 = vsel %vm682_vm14, %v210_v59, %v677_v30 }
 0x158   :  { %v719_v34 = vmul.f32 %v712_v61, %v683_v32 }
 0x15a   :  { %v756_v6 = vadd.f32 %v750_v33, %v719_v34 }
 0x15c   :  { %759 = vst.msk [vmem:[#allocation2] sm:$0xff] %vm758_vm15, %v756_v6 }
 0x15e   :  { %v717_v1 = vpop.permute.xlu0 %716 }
 0x167   :  { %v679_v51 = vpop.permute.xlu1 %678 }
 0x168   :  { %v684_v39 = vsel %vm682_vm14, %v365_v29, %v679_v51 }
 0x169   :  { %v720_v38 = vmul.f32 %v717_v1, %v684_v39 }
 0x16b   :  { %v757_v40 = vadd.f32 %v753_v35, %v720_v38 }
 0x16d   :  { %760 = vst.msk [vmem:[#allocation2 + $0x8] sm:$0xff] %vm758_vm15, %v757_v40 }
 0x16e   :  { %773 = dma.vmem_to_hbm [thread:$0]  %s766_s27, 256, %s768_s30, [#allocation3], %s855_s5, %s855_s5, %s856_s6  }
 0x16f   :  { %842 = dma.done.wait [#allocation3], 256  }
 0x170   :  { %843 = vsyncadd [#allocation3], 4294967040 }
 0x171   :  { %778 = vsyncpa [#allocation3], 1 }

</bundles_post_ra>
